<compile_context>
chip_gen: v7x
topology: tpu7x:2x2x1
jax: 0.10.0
libtpu: 0.0.40
codegen_flags: <defaults>
</compile_context>

<pallas_src>
import functools
import math

import jax
import jax.numpy as jnp
from jax import lax
from jax.experimental import pallas as pl
from jax.experimental.pallas import tpu as pltpu


_TINY_OUT_BYTES = 256 * 1024          # below this, skip the Pallas kernel
_GOLDEN = -1640531527                 # 0x9E3779B9 as signed int32
_H_STREAM = 0x3243F6A9                # stream-separation constant for the h output


def _hash32(x):
    """lowbias32-style avalanche hash on int32 vectors.

    Logical right shifts are emulated as (arithmetic shift) & mask so only
    plain int32 multiply / xor / shift / and ops are emitted (portable between
    Mosaic and the interpreter)."""
    x = (x ^ ((x >> 16) & jnp.int32(0x0000FFFF))) * jnp.int32(0x21F0AAAD)
    x = (x ^ ((x >> 15) & jnp.int32(0x0001FFFF))) * jnp.int32(0x735A2D97)
    x = x ^ ((x >> 15) & jnp.int32(0x0001FFFF))
    return x


def _no_context_dropout_kernel(seed_ref, c_ref, h_ref, c_out_ref, h_out_ref, *,
                               p: float, b_stride: int):
    """Broadcast + inverted dropout for one output tile.

    c_ref / h_ref   : (L_TILE, 1, H_EFF) parameter rows for these layers
    c_out / h_out   : (L_TILE, TB, H_EFF) output tiles (H_EFF lane-dense)
    """
    l_tile, tb, h_eff = c_out_ref.shape
    i = pl.program_id(0)
    j = pl.program_id(1)

    # Unique global element index (counter) for the hash-based dropout bits.
    shape = (l_tile, tb, h_eff)
    l_idx = lax.broadcasted_iota(jnp.int32, shape, 0) + i * l_tile
    b_idx = lax.broadcasted_iota(jnp.int32, shape, 1) + j * tb
    e_idx = lax.broadcasted_iota(jnp.int32, shape, 2)
    idx = (l_idx * jnp.int32(b_stride) + b_idx) * jnp.int32(h_eff) + e_idx

    mix = seed_ref[0] * jnp.int32(_GOLDEN)     # decorrelate different seeds
    # drop iff low-31-bits(hash) < floor(p * 2^31); the <2^-31 truncation of the
    # keep probability is negligible (documented, not a bug).
    thresh = jnp.int32(min(int(p * (2.0 ** 31)), 2 ** 31 - 1))
    scale = jnp.float32(1.0 / (1.0 - p))
    zero = jnp.zeros((), c_out_ref.dtype)

    # ---- c path: scale + cast the row once, select in the output dtype. ----
    c_row = (c_ref[...].astype(jnp.float32) * scale).astype(c_out_ref.dtype)
    keep_c = (_hash32(idx + mix) & jnp.int32(0x7FFFFFFF)) >= thresh
    c_out_ref[...] = jnp.where(keep_c, c_row, zero)

    # ---- h path (after c's store so its writeback DMA overlaps this work). ----
    h_row = (h_ref[...].astype(jnp.float32) * scale).astype(h_out_ref.dtype)
    keep_h = (_hash32(idx + mix + jnp.int32(_H_STREAM)) &
              jnp.int32(0x7FFFFFFF)) >= thresh
    h_out_ref[...] = jnp.where(keep_h, h_row, zero)


def _effective_layout(batch, hidden):
    """Lane-dense folded view of the per-layer (batch, hidden) slab.

    Returns (b_eff, h_eff, rep): output handled as (nlayers, b_eff, h_eff) with
    the parameter row replicated `rep` times along the last axis."""
    if hidden % 128 == 0:
        return batch, hidden, 1                       # already lane-dense
    rep = 128 // math.gcd(hidden, 128)
    r = rep * hidden                                  # lcm(hidden, 128)
    f = batch * hidden
    if f % r == 0:
        return f // r, r, rep                         # fold to 128-multiple lanes
    return batch, hidden, 1                           # tiny/odd case: natural layout


def _cdiv(a, b):
    return -(-a // b)


def _choose_tiles(nlayers, b_eff, h_eff, dtype_size):
    """Pick (L_TILE, TB) for the (nlayers, b_eff, h_eff) effective layout."""
    # 2 MiB per output tile: 2 outputs x 2 pipeline buffers + int32 mask temps
    # stay well under v5e's 16 MiB default scoped VMEM (v6e/v7x have headroom).
    budget = 2 * 1024 * 1024
    sub = max(8, 32 // max(1, dtype_size))            # 8 f32 / 16 bf16 / 32 int8
    row_bytes = h_eff * dtype_size
    layer_bytes = b_eff * row_bytes
    total_bytes = nlayers * layer_bytes

    if total_bytes <= budget:                         # everything in one grid step
        l_tile, tb = nlayers, b_eff
    elif layer_bytes <= budget:                       # fold several whole layers
        l_tile = min(nlayers, max(1, budget // layer_bytes))
        tb = b_eff
    else:                                             # one layer, tile the batch
        l_tile = 1
        tb = min(b_eff, max(sub, (budget // row_bytes) // sub * sub))

    # v7x megacore: guarantee >= 2 tiles on a parallel axis for non-trivial
    # outputs so the second TensorCore participates (no effect on v5e/v6e).
    if total_bytes > (1 << 20) and _cdiv(nlayers, l_tile) * _cdiv(b_eff, tb) < 2:
        if nlayers >= 2:
            l_tile = (nlayers + 1) // 2
        elif b_eff > sub:
            half = (b_eff + 1) // 2
            tb = max(sub, _cdiv(half, sub) * sub)
    return int(l_tile), int(tb)


def no_context_forward(x, c_init, h_init, *, dropout_p=0.1, training=False,
                       seed=0, use_pallas=None):
    """Pallas implementation of NoContext.forward.

    x       : any array whose leading dim is the batch size (only size(0) used)
    c_init  : (nlayers, 1, hidden) parameter
    h_init  : (nlayers, 1, hidden) parameter
    returns : (c, h), each (nlayers, batch, hidden)
    """
    batch = x.shape[0]
    nlayers, one, hidden = c_init.shape
    assert one == 1
    out_shape = (nlayers, batch, hidden)
    p = float(dropout_p)
    dtype = c_init.dtype

    # ---- Eval / no-op dropout: no kernel launch, keep the broadcast lazy. ----
    if (not training) or p <= 0.0:
        return (jnp.broadcast_to(c_init, out_shape),
                jnp.broadcast_to(h_init, out_shape))
    # ---- p >= 1: torch dropout returns all-zeros. ----
    if p >= 1.0:
        return (jnp.zeros(out_shape, dtype), jnp.zeros(out_shape, h_init.dtype))

    itemsize = jnp.dtype(dtype).itemsize
    total_bytes = nlayers * batch * hidden * itemsize
    if use_pallas is None:
        use_pallas = total_bytes >= _TINY_OUT_BYTES
    scale = 1.0 / (1.0 - p)

    if not use_pallas:
        # Tiny outputs: launch + per-step overhead dominates; let XLA fuse it.
        kc, kh = jax.random.split(jax.random.PRNGKey(seed))
        keep_c = jax.random.bernoulli(kc, 1.0 - p, out_shape)
        keep_h = jax.random.bernoulli(kh, 1.0 - p, out_shape)
        c = jnp.where(keep_c,
                      jnp.broadcast_to(c_init, out_shape).astype(jnp.float32) * scale,
                      0.0).astype(dtype)
        h = jnp.where(keep_h,
                      jnp.broadcast_to(h_init, out_shape).astype(jnp.float32) * scale,
                      0.0).astype(h_init.dtype)
        return c, h

    # ---- Lane-dense effective layout + tiling. ----
    b_eff, h_eff, rep = _effective_layout(batch, hidden)
    c_row = c_init if rep == 1 else jnp.tile(c_init, (1, 1, rep))
    h_row = h_init if rep == 1 else jnp.tile(h_init, (1, 1, rep))

    l_tile, tb = _choose_tiles(nlayers, b_eff, h_eff, itemsize)
    grid = (pl.cdiv(nlayers, l_tile), pl.cdiv(b_eff, tb))
    b_stride = grid[1] * tb            # >= b_eff, keeps element counters unique

    kernel = functools.partial(_no_context_dropout_kernel, p=p, b_stride=b_stride)
    seed_arr = jnp.asarray([seed], dtype=jnp.int32)
    eff_sds = jax.ShapeDtypeStruct((nlayers, b_eff, h_eff), dtype)

    c_out, h_out = pl.pallas_call(
        kernel,
        out_shape=(eff_sds, eff_sds),
        grid=grid,
        in_specs=[
            pl.BlockSpec(memory_space=pltpu.SMEM),                       # seed scalar
            pl.BlockSpec((l_tile, 1, h_eff), lambda i, j: (i, 0, 0)),    # c rows (j-invariant: no re-DMA)
            pl.BlockSpec((l_tile, 1, h_eff), lambda i, j: (i, 0, 0)),    # h rows
        ],
        out_specs=(
            pl.BlockSpec((l_tile, tb, h_eff), lambda i, j: (i, j, 0)),   # c out tile
            pl.BlockSpec((l_tile, tb, h_eff), lambda i, j: (i, j, 0)),   # h out tile
        ),
        compiler_params=pltpu.CompilerParams(
            dimension_semantics=("parallel", "parallel")),
    )(seed_arr, c_row, h_row)

    # Reshape back to the logical (nlayers, batch, hidden) layout (free, contiguous).
    return c_out.reshape(out_shape), h_out.reshape(out_shape)


if __name__ == "__main__":
    key = jax.random.PRNGKey(0)
    kx, kc, kh = jax.random.split(key, 3)

    dropout_p = 0.1
    scale = 1.0 / (1.0 - dropout_p)

    def _dropout_ok(out, ref):
        return bool(jnp.all(jnp.isclose(out, 0.0, atol=1e-6) |
                            jnp.isclose(out, ref * scale, rtol=1e-5, atol=1e-6)))

    # ---- Config A: module-typical small shapes (hidden=32, batch=2, seq=8). ----
    nlayers, hidden, batch, seq = 2, 32, 2, 8
    x = jax.random.normal(kx, (batch, seq, hidden), dtype=jnp.float32)
    # Torch __init__ uses zeros; random values here so the broadcast is verifiable.
    c_init = jax.random.normal(kc, (nlayers, 1, hidden), dtype=jnp.float32)
    h_init = jax.random.normal(kh, (nlayers, 1, hidden), dtype=jnp.float32)
    c_ref = jnp.broadcast_to(c_init, (nlayers, batch, hidden))
    h_ref = jnp.broadcast_to(h_init, (nlayers, batch, hidden))

    # Eval-mode path (no kernel launch, exact broadcast).
    c_ev, h_ev = no_context_forward(x, c_init, h_init,
                                    dropout_p=dropout_p, training=False)
    jax.block_until_ready((c_ev, h_ev))
    assert c_ev.shape == (nlayers, batch, hidden)
    assert h_ev.shape == (nlayers, batch, hidden)
    assert jnp.allclose(c_ev, c_ref) and jnp.allclose(h_ev, h_ref)

    # Training path, forced through the Pallas kernel (natural small layout).
    c_tr, h_tr = no_context_forward(x, c_init, h_init, dropout_p=dropout_p,
                                    training=True, seed=0, use_pallas=True)
    jax.block_until_ready((c_tr, h_tr))
    assert c_tr.shape == (nlayers, batch, hidden)
    assert h_tr.shape == (nlayers, batch, hidden)
    assert _dropout_ok(c_tr, c_ref) and _dropout_ok(h_tr, h_ref)

    # ---- Config B: hidden not a multiple of 128 -> lane-dense folded layout. ----
    nl2, hid2, bat2 = 2, 96, 16
    kc2, kh2 = jax.random.split(jax.random.PRNGKey(1))
    x2 = jnp.zeros((bat2, seq, hid2), dtype=jnp.float32)
    c2 = jax.random.normal(kc2, (nl2, 1, hid2), dtype=jnp.float32)
    h2 = jax.random.normal(kh2, (nl2, 1, hid2), dtype=jnp.float32)
    c2_ref = jnp.broadcast_to(c2, (nl2, bat2, hid2))
    h2_ref = jnp.broadcast_to(h2, (nl2, bat2, hid2))

    c2_tr, h2_tr = no_context_forward(x2, c2, h2, dropout_p=dropout_p,
                                      training=True, seed=7, use_pallas=True)
    jax.block_until_ready((c2_tr, h2_tr))
    assert c2_tr.shape == (nl2, bat2, hid2) and h2_tr.shape == (nl2, bat2, hid2)
    assert _dropout_ok(c2_tr, c2_ref) and _dropout_ok(h2_tr, h2_ref)

    # Loose statistical checks on the hash-based dropout (n = 3072 per tensor).
    zc = float(jnp.mean(jnp.isclose(c2_tr, 0.0, atol=1e-6)))
    zh = float(jnp.mean(jnp.isclose(h2_tr, 0.0, atol=1e-6)))
    assert 0.02 < zc < 0.25 and 0.02 < zh < 0.25
    # c / h streams must be decorrelated (masks differ somewhere).
    assert bool(jnp.any(jnp.isclose(c2_tr, 0.0, atol=1e-6) !=
                        jnp.isclose(h2_tr, 0.0, atol=1e-6)))

    # ---- Tiny-output auto-dispatch (pure-jnp fused path) also stays correct. ----
    c_sm, h_sm = no_context_forward(x, c_init, h_init, dropout_p=dropout_p,
                                    training=True, seed=3)
    jax.block_until_ready((c_sm, h_sm))
    assert _dropout_ok(c_sm, c_ref) and _dropout_ok(h_sm, h_ref)

    print("KERNEL_OK")
</pallas_src>

<mosaic_0001>
module attributes {stable_mosaic.version = 11 : i64} {
  func.func @_no_context_dropout_kernel(%arg0: i32, %arg1: i32, %arg2: memref<1xi32, #tpu.memory_space<smem>>, %arg3: memref<2x1x32xf32, #tpu.memory_space<vmem>>, %arg4: memref<2x1x32xf32, #tpu.memory_space<vmem>>, %arg5: memref<2x2x32xf32, #tpu.memory_space<vmem>>, %arg6: memref<2x2x32xf32, #tpu.memory_space<vmem>>) attributes {dimension_semantics = [#tpu.dimension_semantics<parallel>, #tpu.dimension_semantics<parallel>], iteration_bounds = array<i64: 1, 1>, scalar_prefetch = 0 : i64, scratch_operands = 0 : i64, tpu.core_type = #tpu.core_type<tc>, window_params = [{transform_indices = @transform_0, window_bounds = array<i64: 1>}, {transform_indices = @transform_1, window_bounds = array<i64: 2, 1, 32>}, {transform_indices = @transform_2, window_bounds = array<i64: 2, 1, 32>}, {transform_indices = @transform_3, window_bounds = array<i64: 2, 2, 32>}, {transform_indices = @transform_4, window_bounds = array<i64: 2, 2, 32>}]} {
    %0 = tpu.iota {dimensions = array<i32: 0>} : vector<2x2x32xi32>
    %c2_i32 = arith.constant 2 : i32
    %1 = arith.muli %arg0, %c2_i32 : i32
    %2 = vector.broadcast %1 : i32 to vector<2x2x32xi32>
    %3 = arith.addi %0, %2 : vector<2x2x32xi32>
    %4 = tpu.iota {dimensions = array<i32: 1>} : vector<2x2x32xi32>
    %c2_i32_0 = arith.constant 2 : i32
    %5 = arith.muli %arg1, %c2_i32_0 : i32
    %6 = vector.broadcast %5 : i32 to vector<2x2x32xi32>
    %7 = arith.addi %4, %6 : vector<2x2x32xi32>
    %8 = tpu.iota {dimensions = array<i32: 2>} : vector<2x2x32xi32>
    %c2_i32_1 = arith.constant 2 : i32
    %9 = vector.broadcast %c2_i32_1 : i32 to vector<2x2x32xi32>
    %10 = arith.muli %3, %9 : vector<2x2x32xi32>
    %11 = arith.addi %10, %7 : vector<2x2x32xi32>
    %c32_i32 = arith.constant 32 : i32
    %12 = vector.broadcast %c32_i32 : i32 to vector<2x2x32xi32>
    %13 = arith.muli %11, %12 : vector<2x2x32xi32>
    %14 = arith.addi %13, %8 : vector<2x2x32xi32>
    %c0 = arith.constant 0 : index
    %15 = memref.load %arg2[%c0] : memref<1xi32, #tpu.memory_space<smem>>
    %c-1640531527_i32 = arith.constant -1640531527 : i32
    %16 = arith.muli %15, %c-1640531527_i32 : i32
    %c0_2 = arith.constant 0 : index
    %c0_3 = arith.constant 0 : index
    %c0_4 = arith.constant 0 : index
    %17 = vector.load %arg3[%c0_2, %c0_3, %c0_4] : memref<2x1x32xf32, #tpu.memory_space<vmem>>, vector<2x1x32xf32>
    %cst = arith.constant 1.11111116 : f32
    %18 = vector.broadcast %cst : f32 to vector<2x1x32xf32>
    %19 = arith.mulf %17, %18 : vector<2x1x32xf32>
    %20 = vector.broadcast %16 : i32 to vector<2x2x32xi32>
    %21 = arith.addi %14, %20 : vector<2x2x32xi32>
    %c16_i32 = arith.constant 16 : i32
    %22 = vector.broadcast %c16_i32 : i32 to vector<2x2x32xi32>
    %23 = arith.shrsi %21, %22 : vector<2x2x32xi32>
    %c65535_i32 = arith.constant 65535 : i32
    %24 = vector.broadcast %c65535_i32 : i32 to vector<2x2x32xi32>
    %25 = arith.andi %23, %24 : vector<2x2x32xi32>
    %26 = arith.xori %21, %25 : vector<2x2x32xi32>
    %c569420461_i32 = arith.constant 569420461 : i32
    %27 = vector.broadcast %c569420461_i32 : i32 to vector<2x2x32xi32>
    %28 = arith.muli %26, %27 : vector<2x2x32xi32>
    %c15_i32 = arith.constant 15 : i32
    %29 = vector.broadcast %c15_i32 : i32 to vector<2x2x32xi32>
    %30 = arith.shrsi %28, %29 : vector<2x2x32xi32>
    %c131071_i32 = arith.constant 131071 : i32
    %31 = vector.broadcast %c131071_i32 : i32 to vector<2x2x32xi32>
    %32 = arith.andi %30, %31 : vector<2x2x32xi32>
    %33 = arith.xori %28, %32 : vector<2x2x32xi32>
    %c1935289751_i32 = arith.constant 1935289751 : i32
    %34 = vector.broadcast %c1935289751_i32 : i32 to vector<2x2x32xi32>
    %35 = arith.muli %33, %34 : vector<2x2x32xi32>
    %c15_i32_5 = arith.constant 15 : i32
    %36 = vector.broadcast %c15_i32_5 : i32 to vector<2x2x32xi32>
    %37 = arith.shrsi %35, %36 : vector<2x2x32xi32>
    %c131071_i32_6 = arith.constant 131071 : i32
    %38 = vector.broadcast %c131071_i32_6 : i32 to vector<2x2x32xi32>
    %39 = arith.andi %37, %38 : vector<2x2x32xi32>
    %40 = arith.xori %35, %39 : vector<2x2x32xi32>
    %c2147483647_i32 = arith.constant 2147483647 : i32
    %41 = vector.broadcast %c2147483647_i32 : i32 to vector<2x2x32xi32>
    %42 = arith.andi %40, %41 : vector<2x2x32xi32>
    %c214748364_i32 = arith.constant 214748364 : i32
    %43 = vector.broadcast %c214748364_i32 : i32 to vector<2x2x32xi32>
    %44 = arith.cmpi sge, %42, %43 : vector<2x2x32xi32>
    %cst_7 = arith.constant 0.000000e+00 : f32
    %45 = vector.shape_cast %19 : vector<2x1x32xf32> to vector<2x1x32xf32>
    %46 = vector.broadcast %45 : vector<2x1x32xf32> to vector<2x2x32xf32>
    %47 = vector.broadcast %cst_7 : f32 to vector<2x2x32xf32>
    %48 = arith.select %44, %46, %47 : vector<2x2x32xi1>, vector<2x2x32xf32>
    %c0_8 = arith.constant 0 : index
    %c0_9 = arith.constant 0 : index
    %c0_10 = arith.constant 0 : index
    %49 = vector.load %arg5[%c0_8, %c0_9, %c0_10] : memref<2x2x32xf32, #tpu.memory_space<vmem>>, vector<2x2x32xf32>
    tpu.vector_store %arg5[%c0_8, %c0_9, %c0_10], %48 {strides = array<i32>} : memref<2x2x32xf32, #tpu.memory_space<vmem>>, vector<2x2x32xf32>,
    %c0_11 = arith.constant 0 : index
    %c0_12 = arith.constant 0 : index
    %c0_13 = arith.constant 0 : index
    %50 = vector.load %arg4[%c0_11, %c0_12, %c0_13] : memref<2x1x32xf32, #tpu.memory_space<vmem>>, vector<2x1x32xf32>
    %cst_14 = arith.constant 1.11111116 : f32
    %51 = vector.broadcast %cst_14 : f32 to vector<2x1x32xf32>
    %52 = arith.mulf %50, %51 : vector<2x1x32xf32>
    %53 = vector.broadcast %16 : i32 to vector<2x2x32xi32>
    %54 = arith.addi %14, %53 : vector<2x2x32xi32>
    %c843314857_i32 = arith.constant 843314857 : i32
    %55 = vector.broadcast %c843314857_i32 : i32 to vector<2x2x32xi32>
    %56 = arith.addi %54, %55 : vector<2x2x32xi32>
    %c16_i32_15 = arith.constant 16 : i32
    %57 = vector.broadcast %c16_i32_15 : i32 to vector<2x2x32xi32>
    %58 = arith.shrsi %56, %57 : vector<2x2x32xi32>
    %c65535_i32_16 = arith.constant 65535 : i32
    %59 = vector.broadcast %c65535_i32_16 : i32 to vector<2x2x32xi32>
    %60 = arith.andi %58, %59 : vector<2x2x32xi32>
    %61 = arith.xori %56, %60 : vector<2x2x32xi32>
    %c569420461_i32_17 = arith.constant 569420461 : i32
    %62 = vector.broadcast %c569420461_i32_17 : i32 to vector<2x2x32xi32>
    %63 = arith.muli %61, %62 : vector<2x2x32xi32>
    %c15_i32_18 = arith.constant 15 : i32
    %64 = vector.broadcast %c15_i32_18 : i32 to vector<2x2x32xi32>
    %65 = arith.shrsi %63, %64 : vector<2x2x32xi32>
    %c131071_i32_19 = arith.constant 131071 : i32
    %66 = vector.broadcast %c131071_i32_19 : i32 to vector<2x2x32xi32>
    %67 = arith.andi %65, %66 : vector<2x2x32xi32>
    %68 = arith.xori %63, %67 : vector<2x2x32xi32>
    %c1935289751_i32_20 = arith.constant 1935289751 : i32
    %69 = vector.broadcast %c1935289751_i32_20 : i32 to vector<2x2x32xi32>
    %70 = arith.muli %68, %69 : vector<2x2x32xi32>
    %c15_i32_21 = arith.constant 15 : i32
    %71 = vector.broadcast %c15_i32_21 : i32 to vector<2x2x32xi32>
    %72 = arith.shrsi %70, %71 : vector<2x2x32xi32>
    %c131071_i32_22 = arith.constant 131071 : i32
    %73 = vector.broadcast %c131071_i32_22 : i32 to vector<2x2x32xi32>
    %74 = arith.andi %72, %73 : vector<2x2x32xi32>
    %75 = arith.xori %70, %74 : vector<2x2x32xi32>
    %c2147483647_i32_23 = arith.constant 2147483647 : i32
    %76 = vector.broadcast %c2147483647_i32_23 : i32 to vector<2x2x32xi32>
    %77 = arith.andi %75, %76 : vector<2x2x32xi32>
    %c214748364_i32_24 = arith.constant 214748364 : i32
    %78 = vector.broadcast %c214748364_i32_24 : i32 to vector<2x2x32xi32>
    %79 = arith.cmpi sge, %77, %78 : vector<2x2x32xi32>
    %cst_25 = arith.constant 0.000000e+00 : f32
    %80 = vector.shape_cast %52 : vector<2x1x32xf32> to vector<2x1x32xf32>
    %81 = vector.broadcast %80 : vector<2x1x32xf32> to vector<2x2x32xf32>
    %82 = vector.broadcast %cst_25 : f32 to vector<2x2x32xf32>
    %83 = arith.select %79, %81, %82 : vector<2x2x32xi1>, vector<2x2x32xf32>
    %c0_26 = arith.constant 0 : index
    %c0_27 = arith.constant 0 : index
    %c0_28 = arith.constant 0 : index
    %84 = vector.load %arg6[%c0_26, %c0_27, %c0_28] : memref<2x2x32xf32, #tpu.memory_space<vmem>>, vector<2x2x32xf32>
    tpu.vector_store %arg6[%c0_26, %c0_27, %c0_28], %83 {strides = array<i32>} : memref<2x2x32xf32, #tpu.memory_space<vmem>>, vector<2x2x32xf32>,
    return
  }
  func.func @transform_0(%arg0: i32, %arg1: i32) -> i32 {
    %c0_i32 = arith.constant 0 : i32
    %c0_i32_0 = arith.constant 0 : i32
    return %c0_i32 : i32
  }
  func.func @transform_1(%arg0: i32, %arg1: i32) -> (i32, i32, i32) {
    %c0_i32 = arith.constant 0 : i32
    %c0_i32_0 = arith.constant 0 : i32
    %c0_i32_1 = arith.constant 0 : i32
    return %arg0, %c0_i32, %c0_i32_0 : i32, i32, i32
  }
  func.func @transform_2(%arg0: i32, %arg1: i32) -> (i32, i32, i32) {
    %c0_i32 = arith.constant 0 : i32
    %c0_i32_0 = arith.constant 0 : i32
    %c0_i32_1 = arith.constant 0 : i32
    return %arg0, %c0_i32, %c0_i32_0 : i32, i32, i32
  }
  func.func @transform_3(%arg0: i32, %arg1: i32) -> (i32, i32, i32) {
    %c0_i32 = arith.constant 0 : i32
    %c0_i32_0 = arith.constant 0 : i32
    return %arg0, %arg1, %c0_i32 : i32, i32, i32
  }
  func.func @transform_4(%arg0: i32, %arg1: i32) -> (i32, i32, i32) {
    %c0_i32 = arith.constant 0 : i32
    %c0_i32_0 = arith.constant 0 : i32
    return %arg0, %arg1, %c0_i32 : i32, i32, i32
  }
}

</mosaic_0001>

<bundles_post_ra>
// kernel: tpu_custom_call.1
= control target key start
LH: loop header
LB: loop body
LE: loop exit
PB: predicated region body
PF: predicated region fallthrough
CT: control target
= control target key end

     0   :  { %11 = vsyncpa [#allocation4], 0  ;;  %v22_v0 = vlaneseq  ;;  %s312_s0 = inlined_call_operand.<no memory space> [shape: s32[1], index: 0, kind: input, shape index: {}]   ;;  %s313_s1 = inlined_call_operand.vmem [shape: f32[2,1,32], index: 1, kind: input, shape index: {}]   ;;  %s314_s2 = inlined_call_operand.vmem [shape: f32[2,1,32], index: 2, kind: input, shape index: {}]   ;;  %s315_s3 = inlined_call_operand.hbm [shape: f32[2,2,32], index: 3, kind: output, shape index: {0}]   ;;  %s316_s4 = inlined_call_operand.hbm [shape: f32[2,2,32], index: 4, kind: output, shape index: {1}]  }
   0x1   :  { %s38_s17 = smul.u32 2654435769, %s312_s0 }
   0x2   :  { %v23_v1 = vshrl.u32 %v22_v0, 7  ;;  %v28_v2 = vand.u32 127, %v22_v0 }
   0x4   :  { %v33_v3 = vmul.u32 32, %v23_v1  ;;  %v32_v4 = vadd.s32 2, %v23_v1 }
   0x5   :  { %12 = vsyncpa [#allocation6], 0  ;;  %v43_v5 = vstv %s38_s17  ;;  %v39_v25 = vld [vmem:[%s313_s1] sm:$0x1]  ;;  %v40_v30 = vld [vmem:[%s313_s1 + $0x1] sm:$0x1] }
   0x6   :  { %v35_v6 = vadd.s32 %v33_v3, %v28_v2  ;;  %v34_v7 = vmul.u32 32, %v32_v4  ;;  %v89_v33 = vld [vmem:[%s314_s2] sm:$0x1]  ;;  %v41_v36 = vmul.f32 1.1111112, %v39_v25  ;;  %v76_v37 = vsub.s32 0, %v23_v1 }
   0x7   :  { %v90_v38 = vld [vmem:[%s314_s2 + $0x1] sm:$0x1]  ;;  %v42_v43 = vmul.f32 1.1111112, %v40_v30  ;;  %v91_v44 = vmul.f32 1.1111112, %v89_v33 }
   0x8   :  { %v44_v8 = vadd.s32 %v43_v5, %v35_v6  ;;  %v36_v9 = vadd.s32 %v34_v7, %v28_v2  ;;  %v77_v49 = vrot.slane %v41_v36, %v76_v37  ;;  %v92_v50 = vmul.f32 1.1111112, %v90_v38  ;;  %s233_s1 = smov [#allocation3]   ;;  %s234_s25 = smov [#allocation5]  }
   0x9   :  { %vm86_vm0 = vcmask 254976   ;;  %v81_v55 = vrot.slane %v42_v43, %v76_v37  ;;  %v126_v56 = vrot.slane %v91_v44, %v76_v37  ;;  %s142_s2 = sshll.u32 %s233_s1, 4  ;;  %s154_s26 = sshll.u32 %s234_s25, 4  ;;  %s143_s2 = int_to_ptr.vmem [resolvable:$true] %s142_s2  ;;  %s280_s26 = int_to_ptr.vmem [resolvable:$true] %s154_s26 }
   0xa   :  { %v169_v10 = vshrl.u32 %v44_v8, 16  ;;  %v45_v11 = vadd.s32 %v43_v5, %v36_v9  ;;  %v93_v12 = vadd.s32 843314857, %v44_v8  ;;  %v130_v61 = vrot.slane %v92_v50, %v76_v37  ;;  %s185_s27 = scalar_lea.vmem %s143_s2, 64  ;;  %p190_p1 = scmp.lt.s32.totalorder %s143_s2, %s143_s2 }
   0xb   :  { %p186_p0 = scmp.ne.s32.totalorder %s143_s2, %s185_s27  ;;  %p191_p2 = scmp.lt.s32.totalorder %s185_s27, %s185_s27 }
   0xc   :  { %v50_v13 = vxor.u32 %v169_v10, %v44_v8  ;;  %v170_v14 = vshrl.u32 %v45_v11, 16  ;;  %v175_v15 = vshrl.u32 %v93_v12, 16  ;;  %v94_v16 = vadd.s32 843314857, %v45_v11 }
   0xd   :  { %p192_p3 = por %p191_p2, %p190_p1 }
   0xe   :  { %v52_v17 = vmul.u32 569420461, %v50_v13  ;;  %v51_v18 = vxor.u32 %v170_v14, %v45_v11  ;;  %v99_v19 = vxor.u32 %v175_v15, %v93_v12  ;;  %v176_v20 = vshrl.u32 %v94_v16, 16 }
   0xf   :  { %p193_p4 = pnand %p192_p3, %p186_p0 }
  0x10   :  { %v171_v21 = vshrl.u32 %v52_v17, 15  ;;  %v53_v22 = vmul.u32 569420461, %v51_v18  ;;  %v101_v23 = vmul.u32 569420461, %v99_v19  ;;  %v100_v24 = vxor.u32 %v176_v20, %v94_v16 }
  0x12   :  { %v58_v26 = vxor.u32 %v171_v21, %v52_v17  ;;  %v172_v27 = vshrl.u32 %v53_v22, 15  ;;  %v177_v28 = vshrl.u32 %v101_v23, 15  ;;  %v102_v29 = vmul.u32 569420461, %v100_v24 }
  0x14   :  { %v60_v31 = vmul.u32 1935289751, %v58_v26  ;;  %v59_v32 = vxor.u32 %v172_v27, %v53_v22  ;;  %v107_v34 = vxor.u32 %v177_v28, %v101_v23  ;;  %v178_v35 = vshrl.u32 %v102_v29, 15 }
  0x16   :  { %v173_v39 = vshrl.u32 %v60_v31, 15  ;;  %v61_v40 = vmul.u32 1935289751, %v59_v32  ;;  %v109_v41 = vmul.u32 1935289751, %v107_v34  ;;  %v108_v42 = vxor.u32 %v178_v35, %v102_v29 }
  0x18   :  { %v66_v45 = vxor.u32 %v173_v39, %v60_v31  ;;  %v174_v46 = vshrl.u32 %v61_v40, 15  ;;  %v179_v47 = vshrl.u32 %v109_v41, 15  ;;  %v110_v48 = vmul.u32 1935289751, %v108_v42 }
  0x1a   :  { %v68_v51 = vand.u32 2147483647, %v66_v45  ;;  %v67_v52 = vxor.u32 %v174_v46, %v61_v40  ;;  %v115_v53 = vxor.u32 %v179_v47, %v109_v41  ;;  %v180_v54 = vshrl.u32 %v110_v48, 15 }
  0x1c   :  { %vm70_vm1 = vcmp.ge.s32.totalorder %v68_v51, 214748364  ;;  %v69_v57 = vand.u32 2147483647, %v67_v52  ;;  %v117_v58 = vand.u32 2147483647, %v115_v53  ;;  %v116_v59 = vxor.u32 %v180_v54, %v110_v48 }
  0x1d   :  { %v84_v60 = vsel %vm70_vm1, %v77_v49, 0.0 }
  0x1e   :  { %87 = vst.msk [vmem:[#allocation3] sm:$0x3] %vm86_vm0, %v84_v60  ;;  %vm71_vm2 = vcmp.ge.s32.totalorder %v69_v57, 214748364  ;;  %vm119_vm3 = vcmp.ge.s32.totalorder %v117_v58, 214748364 }
  0x1f   :  { %v118_v62 = vand.u32 2147483647, %v116_v59  ;;  %v85_v63 = vsel %vm71_vm2, %v81_v55, 0.0  ;;  %v133_v0 = vsel %vm119_vm3, %v126_v56, 0.0 }
  0x20   :  { %88 = vst.msk [vmem:[#allocation3 + $0x2] sm:$0x3] %vm86_vm0, %v85_v63  ;;  %135 = vst.msk [vmem:[#allocation5] sm:$0x3] %vm86_vm0, %v133_v0 }
  0x21   :  { %vm120_vm4 = vcmp.ge.s32.totalorder %v118_v62, 214748364 }
  0x22   :  { %v134_v1 = vsel %vm120_vm4, %v130_v61, 0.0 }
  0x23   :  { %196 = shalt.err (!%p193_p4)
}
  0x24   :  { %s197_s30 = scalar_lea.hbm %s315_s3, 64 }
  0x25   :  { %p198_p5 = scmp.ne.s32.totalorder %s315_s3, %s197_s30  ;;  %p201_p6 = scmp.lt.u32.totalorder %s197_s30, %s315_s3 }
  0x27   :  { %p203_p7 = pnand %p201_p6, %p198_p5 }
  0x29   :  { %206 = shalt.err (!%p203_p7)
}
  0x2a   :  { %s235_s9 = smov 32   ;;  %s236_s10 = smov 2   ;;  %136 = vst.msk [vmem:[#allocation5 + $0x2] sm:$0x3] %vm86_vm0, %v134_v1 }
  0x2b   :  { %148 = dma.vmem_to_hbm [thread:$0]  %s143_s2, 64, %s315_s3, [#allocation4], %s235_s9, %s235_s9, %s236_s10  }
  0x2c   :  { %s207_s13 = scalar_lea.vmem %s280_s26, 64  ;;  %p212_p9 = scmp.lt.s32.totalorder %s280_s26, %s280_s26 }
  0x2d   :  { %p208_p8 = scmp.ne.s32.totalorder %s280_s26, %s207_s13  ;;  %p213_p10 = scmp.lt.s32.totalorder %s207_s13, %s207_s13 }
  0x2f   :  { %p214_p11 = por %p213_p10, %p212_p9 }
  0x31   :  { %p215_p12 = pnand %p214_p11, %p208_p8 }
  0x33   :  { %218 = shalt.err (!%p215_p12)
}
  0x34   :  { %s219_s16 = scalar_lea.hbm %s316_s4, 64 }
  0x35   :  { %p220_p13 = scmp.ne.s32.totalorder %s316_s4, %s219_s16  ;;  %p223_p0 = scmp.lt.u32.totalorder %s219_s16, %s316_s4 }
  0x37   :  { %p225_p1 = pnand %p223_p0, %p220_p13 }
  0x39   :  { %228 = shalt.err (!%p225_p1)
}
  0x3a   :  { %160 = dma.vmem_to_hbm [thread:$0]  %s280_s26, 64, %s316_s4, [#allocation6], %s235_s9, %s235_s9, %s236_s10  }
  0x3b   :  { %229 = dma.done.wait [#allocation4], 64  }
  0x3c   :  { %230 = vsyncadd [#allocation4], 4294967232 }
  0x3d   :  { %231 = dma.done.wait [#allocation6], 64  }
  0x3e   :  { %232 = vsyncadd [#allocation6], 4294967232 }
  0x3f   :  { %167 = vsyncpa [#allocation4], 1 }
  0x40   :  { %168 = vsyncpa [#allocation6], 1 }

</bundles_post_ra>
